<compile_context>
chip_gen: v7x
topology: tpu7x:2x2x1
jax: 0.10.0
libtpu: 0.0.40
codegen_flags: <defaults>
</compile_context>

<pallas_src>
import functools

import jax
import jax.numpy as jnp
import numpy as np
from jax.experimental import pallas as pl
from jax.experimental.pallas import tpu as pltpu


def _round_up(v, m):
    return (v + m - 1) // m * m


def _delta_linear_kernel(x_ref, wt_ref, b_ref, at_ref, bmt_ref, o_ref,
                         acc_ref, low_ref):
    # Grid: (i over M tiles, j over H_out tiles, k over H_in tiles)
    #   x_ref:   (TM, TK)   activation tile
    #   wt_ref:  (TK, TN)   pre-transposed base weight tile
    #   b_ref:   (1,  TN)   bias tile
    #   at_ref:  (TK, r)    pre-transposed LoRA down-proj tile
    #   bmt_ref: (r,  TN)   pre-transposed (scale-folded) LoRA up-proj tile
    #   acc_ref: (TM, TN)   f32 base accumulator (VMEM scratch)
    #   low_ref: (TM, r)    f32 low-rank accumulator (VMEM scratch)
    k = pl.program_id(2)

    @pl.when(k == 0)
    def _():
        acc_ref[...] = jnp.zeros_like(acc_ref)
        low_ref[...] = jnp.zeros_like(low_ref)

    x = x_ref[...]
    acc_ref[...] += jnp.dot(x, wt_ref[...], preferred_element_type=jnp.float32)
    low_ref[...] += jnp.dot(x, at_ref[...], preferred_element_type=jnp.float32)

    @pl.when(k == pl.num_programs(2) - 1)
    def _():
        delta = jnp.dot(low_ref[...], bmt_ref[...],
                        preferred_element_type=jnp.float32)
        o_ref[...] = (acc_ref[...] + b_ref[...] + delta).astype(o_ref.dtype)


@functools.partial(jax.jit, static_argnames=("tm", "tn", "tk"))
def model_with_delta_forward(x, W, b, A, Bm, scale, *, tm=256, tn=256, tk=512):
    """x: [B, S, H_in] -> [B, S, H_out]; fused base-linear + low-rank delta."""
    Bsz, S, H_in = x.shape
    H_out = W.shape[0]
    r = A.shape[0]
    M = Bsz * S

    # One-time layout plumbing in the wrapper (keeps the kernel transpose-free).
    Wt = W.T                                    # (H_in, H_out)
    At = A.T                                    # (H_in, r)
    Bmt = (jnp.asarray(scale, W.dtype) * Bm).T  # (r, H_out), scale folded in
    b2 = b.reshape(1, H_out)

    # Effective tile sizes: shrink to the (rounded) dim for small problems,
    # keep the big MXU-friendly tiles for large ones.
    tm_eff = min(tm, _round_up(M, 8))
    tn_eff = tn if H_out >= tn else H_out
    tk_eff = tk if H_in >= tk else H_in

    Mp = _round_up(M, tm_eff)
    Np = _round_up(H_out, tn_eff)
    Kp = _round_up(H_in, tk_eff)

    x2 = x.reshape(M, H_in)
    if (Mp, Kp) != (M, H_in):
        x2 = jnp.pad(x2, ((0, Mp - M), (0, Kp - H_in)))
    if (Kp, Np) != (H_in, H_out):
        Wt = jnp.pad(Wt, ((0, Kp - H_in), (0, Np - H_out)))
    if Kp != H_in:
        At = jnp.pad(At, ((0, Kp - H_in), (0, 0)))
    if Np != H_out:
        Bmt = jnp.pad(Bmt, ((0, 0), (0, Np - H_out)))
        b2 = jnp.pad(b2, ((0, 0), (0, Np - H_out)))

    grid = (Mp // tm_eff, Np // tn_eff, Kp // tk_eff)

    out2 = pl.pallas_call(
        _delta_linear_kernel,
        out_shape=jax.ShapeDtypeStruct((Mp, Np), x.dtype),
        grid_spec=pltpu.PrefetchScalarGridSpec(
            num_scalar_prefetch=0,
            grid=grid,
            in_specs=[
                pl.BlockSpec((tm_eff, tk_eff), lambda i, j, k: (i, k)),  # x
                pl.BlockSpec((tk_eff, tn_eff), lambda i, j, k: (k, j)),  # Wt
                pl.BlockSpec((1, tn_eff), lambda i, j, k: (0, j)),       # bias
                pl.BlockSpec((tk_eff, r), lambda i, j, k: (k, 0)),       # At
                pl.BlockSpec((r, tn_eff), lambda i, j, k: (0, j)),       # Bmt
            ],
            out_specs=pl.BlockSpec((tm_eff, tn_eff), lambda i, j, k: (i, j)),
            scratch_shapes=[
                pltpu.VMEM((tm_eff, tn_eff), jnp.float32),  # base accumulator
                pltpu.VMEM((tm_eff, r), jnp.float32),       # low-rank accumulator
            ],
        ),
        compiler_params=pltpu.CompilerParams(
            dimension_semantics=("parallel", "parallel", "arbitrary")),
    )(x2, Wt, b2, At, Bmt)

    return out2[:M, :H_out].reshape(Bsz, S, H_out)


def _reference(x, W, b, A, Bm, scale):
    base = jnp.einsum("bsi,oi->bso", x, W) + b
    delta = jnp.einsum("bsr,or->bso", jnp.einsum("bsi,ri->bsr", x, A), Bm)
    return base + scale * delta


if __name__ == "__main__":
    # Small deterministic shapes consistent with the module.
    Bsz, S, H_in, H_out, rank = 2, 8, 32, 32, 4
    alpha = 8.0
    scale = alpha / rank

    key = jax.random.PRNGKey(0)
    kx, kw, kb, ka, kbm = jax.random.split(key, 5)
    x = jax.random.normal(kx, (Bsz, S, H_in), dtype=jnp.float32)
    W = jax.random.normal(kw, (H_out, H_in), dtype=jnp.float32) * 0.1
    b = jax.random.normal(kb, (H_out,), dtype=jnp.float32) * 0.1
    A = jax.random.normal(ka, (rank, H_in), dtype=jnp.float32) * 0.1
    # NOTE: real LoRA inits Bm to zeros; nonzero here so the delta path is
    # actually exercised/tested.
    Bm = jax.random.normal(kbm, (H_out, rank), dtype=jnp.float32) * 0.1

    out = model_with_delta_forward(x, W, b, A, Bm, scale)
    out = jax.block_until_ready(out)

    ref = _reference(x, W, b, A, Bm, scale)
    np.testing.assert_allclose(np.asarray(out), np.asarray(ref),
                               rtol=1e-5, atol=1e-5)
    print("KERNEL_OK")
</pallas_src>

<mosaic_0001>
module attributes {stable_mosaic.version = 11 : i64} {
  func.func @_delta_linear_kernel(%arg0: i32, %arg1: i32, %arg2: i32, %arg3: memref<16x32xf32, #tpu.memory_space<vmem>>, %arg4: memref<32x32xf32, #tpu.memory_space<vmem>>, %arg5: memref<1x32xf32, #tpu.memory_space<vmem>>, %arg6: memref<32x4xf32, #tpu.memory_space<vmem>>, %arg7: memref<4x32xf32, #tpu.memory_space<vmem>>, %arg8: memref<16x32xf32, #tpu.memory_space<vmem>>, %arg9: memref<16x32xf32, #tpu.memory_space<vmem>>, %arg10: memref<16x4xf32, #tpu.memory_space<vmem>>) attributes {dimension_semantics = [#tpu.dimension_semantics<parallel>, #tpu.dimension_semantics<parallel>, #tpu.dimension_semantics<arbitrary>], iteration_bounds = array<i64: 1, 1, 1>, scalar_prefetch = 0 : i64, scratch_operands = 2 : i64, tpu.core_type = #tpu.core_type<tc>, window_params = [{transform_indices = @transform_0, window_bounds = array<i64: 16, 32>}, {transform_indices = @transform_1, window_bounds = array<i64: 32, 32>}, {transform_indices = @transform_2, window_bounds = array<i64: 1, 32>}, {transform_indices = @transform_3, window_bounds = array<i64: 32, 4>}, {transform_indices = @transform_4, window_bounds = array<i64: 4, 32>}, {transform_indices = @transform_5, window_bounds = array<i64: 16, 32>}]} {
    %c0_i32 = arith.constant 0 : i32
    %0 = arith.cmpi eq, %arg2, %c0_i32 : i32
    %1 = arith.extui %0 : i1 to i32
    %c0_i32_0 = arith.constant 0 : i32
    %2 = arith.cmpi ne, %1, %c0_i32_0 : i32
    scf.if %2 {
      %cst_17 = arith.constant 0.000000e+00 : f32
      %17 = vector.broadcast %cst_17 : f32 to vector<16x32xf32>
      %c0_18 = arith.constant 0 : index
      %c0_19 = arith.constant 0 : index
      %18 = vector.load %arg9[%c0_18, %c0_19] : memref<16x32xf32, #tpu.memory_space<vmem>>, vector<16x32xf32>
      tpu.vector_store %arg9[%c0_18, %c0_19], %17 {strides = array<i32>} : memref<16x32xf32, #tpu.memory_space<vmem>>, vector<16x32xf32>,
      %cst_20 = arith.constant 0.000000e+00 : f32
      %19 = vector.broadcast %cst_20 : f32 to vector<16x4xf32>
      %c0_21 = arith.constant 0 : index
      %c0_22 = arith.constant 0 : index
      %20 = vector.load %arg10[%c0_21, %c0_22] : memref<16x4xf32, #tpu.memory_space<vmem>>, vector<16x4xf32>
      tpu.vector_store %arg10[%c0_21, %c0_22], %19 {strides = array<i32>} : memref<16x4xf32, #tpu.memory_space<vmem>>, vector<16x4xf32>,
    } else {
    }
    %c0 = arith.constant 0 : index
    %c0_1 = arith.constant 0 : index
    %3 = vector.load %arg3[%c0, %c0_1] : memref<16x32xf32, #tpu.memory_space<vmem>>, vector<16x32xf32>
    %c0_2 = arith.constant 0 : index
    %c0_3 = arith.constant 0 : index
    %4 = vector.load %arg9[%c0_2, %c0_3] : memref<16x32xf32, #tpu.memory_space<vmem>>, vector<16x32xf32>
    %c0_4 = arith.constant 0 : index
    %c0_5 = arith.constant 0 : index
    %5 = vector.load %arg4[%c0_4, %c0_5] : memref<32x32xf32, #tpu.memory_space<vmem>>, vector<32x32xf32>
    %cst = arith.constant dense<0.000000e+00> : vector<16x32xf32>
    %6 = tpu.matmul %3, %5, %cst {dimension_numbers = #tpu.dot_dimension_numbers<[1], [0], [0], [1], [0, 0, 1, 1], [], []>} : vector<16x32xf32>, vector<32x32xf32>, vector<16x32xf32> -> vector<16x32xf32>
    %7 = arith.addf %4, %6 : vector<16x32xf32>
    %c0_6 = arith.constant 0 : index
    %c0_7 = arith.constant 0 : index
    %8 = vector.load %arg9[%c0_6, %c0_7] : memref<16x32xf32, #tpu.memory_space<vmem>>, vector<16x32xf32>
    tpu.vector_store %arg9[%c0_6, %c0_7], %7 {strides = array<i32>} : memref<16x32xf32, #tpu.memory_space<vmem>>, vector<16x32xf32>,
    %c0_8 = arith.constant 0 : index
    %c0_9 = arith.constant 0 : index
    %9 = vector.load %arg10[%c0_8, %c0_9] : memref<16x4xf32, #tpu.memory_space<vmem>>, vector<16x4xf32>
    %c0_10 = arith.constant 0 : index
    %c0_11 = arith.constant 0 : index
    %10 = vector.load %arg6[%c0_10, %c0_11] : memref<32x4xf32, #tpu.memory_space<vmem>>, vector<32x4xf32>
    %cst_12 = arith.constant dense<0.000000e+00> : vector<16x4xf32>
    %11 = tpu.matmul %3, %10, %cst_12 {dimension_numbers = #tpu.dot_dimension_numbers<[1], [0], [0], [1], [0, 0, 1, 1], [], []>} : vector<16x32xf32>, vector<32x4xf32>, vector<16x4xf32> -> vector<16x4xf32>
    %12 = arith.addf %9, %11 : vector<16x4xf32>
    %c0_13 = arith.constant 0 : index
    %c0_14 = arith.constant 0 : index
    %13 = vector.load %arg10[%c0_13, %c0_14] : memref<16x4xf32, #tpu.memory_space<vmem>>, vector<16x4xf32>
    tpu.vector_store %arg10[%c0_13, %c0_14], %12 {strides = array<i32>} : memref<16x4xf32, #tpu.memory_space<vmem>>, vector<16x4xf32>,
    %c0_i32_15 = arith.constant 0 : i32
    %14 = arith.cmpi eq, %arg2, %c0_i32_15 : i32
    %15 = arith.extui %14 : i1 to i32
    %c0_i32_16 = arith.constant 0 : i32
    %16 = arith.cmpi ne, %15, %c0_i32_16 : i32
    scf.if %16 {
      %c0_17 = arith.constant 0 : index
      %c0_18 = arith.constant 0 : index
      %17 = vector.load %arg10[%c0_17, %c0_18] : memref<16x4xf32, #tpu.memory_space<vmem>>, vector<16x4xf32>
      %c0_19 = arith.constant 0 : index
      %c0_20 = arith.constant 0 : index
      %18 = vector.load %arg7[%c0_19, %c0_20] : memref<4x32xf32, #tpu.memory_space<vmem>>, vector<4x32xf32>
      %cst_21 = arith.constant dense<0.000000e+00> : vector<16x32xf32>
      %19 = tpu.matmul %17, %18, %cst_21 {dimension_numbers = #tpu.dot_dimension_numbers<[1], [0], [0], [1], [0, 0, 1, 1], [], []>} : vector<16x4xf32>, vector<4x32xf32>, vector<16x32xf32> -> vector<16x32xf32>
      %c0_22 = arith.constant 0 : index
      %c0_23 = arith.constant 0 : index
      %20 = vector.load %arg9[%c0_22, %c0_23] : memref<16x32xf32, #tpu.memory_space<vmem>>, vector<16x32xf32>
      %c0_24 = arith.constant 0 : index
      %c0_25 = arith.constant 0 : index
      %21 = vector.load %arg5[%c0_24, %c0_25] : memref<1x32xf32, #tpu.memory_space<vmem>>, vector<1x32xf32>
      %22 = vector.broadcast %21 : vector<1x32xf32> to vector<16x32xf32>
      %23 = arith.addf %20, %22 : vector<16x32xf32>
      %24 = arith.addf %23, %19 : vector<16x32xf32>
      %c0_26 = arith.constant 0 : index
      %c0_27 = arith.constant 0 : index
      %25 = vector.load %arg8[%c0_26, %c0_27] : memref<16x32xf32, #tpu.memory_space<vmem>>, vector<16x32xf32>
      tpu.vector_store %arg8[%c0_26, %c0_27], %24 {strides = array<i32>} : memref<16x32xf32, #tpu.memory_space<vmem>>, vector<16x32xf32>,
    } else {
    }
    return
  }
  func.func @transform_0(%arg0: i32, %arg1: i32, %arg2: i32) -> (i32, i32) {
    %c0_i32 = arith.constant 0 : i32
    return %arg0, %arg2 : i32, i32
  }
  func.func @transform_1(%arg0: i32, %arg1: i32, %arg2: i32) -> (i32, i32) {
    %c0_i32 = arith.constant 0 : i32
    return %arg2, %arg1 : i32, i32
  }
  func.func @transform_2(%arg0: i32, %arg1: i32, %arg2: i32) -> (i32, i32) {
    %c0_i32 = arith.constant 0 : i32
    %c0_i32_0 = arith.constant 0 : i32
    return %c0_i32, %arg1 : i32, i32
  }
  func.func @transform_3(%arg0: i32, %arg1: i32, %arg2: i32) -> (i32, i32) {
    %c0_i32 = arith.constant 0 : i32
    %c0_i32_0 = arith.constant 0 : i32
    return %arg2, %c0_i32 : i32, i32
  }
  func.func @transform_4(%arg0: i32, %arg1: i32, %arg2: i32) -> (i32, i32) {
    %c0_i32 = arith.constant 0 : i32
    %c0_i32_0 = arith.constant 0 : i32
    return %c0_i32, %arg1 : i32, i32
  }
  func.func @transform_5(%arg0: i32, %arg1: i32, %arg2: i32) -> (i32, i32) {
    %c0_i32 = arith.constant 0 : i32
    return %arg0, %arg1 : i32, i32
  }
}

</mosaic_0001>

<bundles_post_ra>
// kernel: model_with_delta_forward.1
= control target key start
LH: loop header
LB: loop body
LE: loop exit
PB: predicated region body
PF: predicated region fallthrough
CT: control target
= control target key end

     0   :  { %vm25_vm0 = vcmask 261120   ;;  %vm28_vm1 = vcmask 31744   ;;  %v427_v6 = vmov 0.0   ;;  %s525_s0 = inlined_call_operand.vmem [shape: f32[16,32], index: 0, kind: input, shape index: {}]   ;;  %s526_s1 = inlined_call_operand.vmem [shape: f32[32,32], index: 1, kind: input, shape index: {}]   ;;  %s527_s2 = inlined_call_operand.vmem [shape: f32[1,32], index: 2, kind: input, shape index: {}]   ;;  %s528_s3 = inlined_call_operand.vmem [shape: f32[32,4], index: 3, kind: input, shape index: {}]   ;;  %s529_s4 = inlined_call_operand.vmem [shape: f32[4,32], index: 4, kind: input, shape index: {}]   ;;  %s530_s5 = inlined_call_operand.hbm [shape: f32[16,32], index: 5, kind: output, shape index: {}]  }
   0x1   :  { %v127_v0 = vld [vmem:[%s528_s3] sm:$0xff]  ;;  %v128_v1 = vld [vmem:[%s528_s3 + $0x8] sm:$0xff]  ;;  %v129_v2 = vld [vmem:[%s528_s3 + $0x10] sm:$0xff]  ;;  %30 = vst.msk [vmem:[#allocation3 + $0x8] sm:$0xff] %vm28_vm1, %v427_v6 }
   0x2   :  { %v391_v3 = vpack.c.bf16 %v128_v1, %v127_v0  ;;  %v130_v4 = vld [vmem:[%s528_s3 + $0x18] sm:$0xff]  ;;  %v31_v5 = vld [vmem:[%s525_s0] sm:$0xff]  ;;  %26 = vst.msk [vmem:[#allocation2] sm:$0xff] %vm25_vm0, %v427_v6  ;;  %27 = vst.msk [vmem:[#allocation2 + $0x8] sm:$0xff] %vm25_vm0, %v427_v6 }
   0x3   :  { %29 = vst.msk [vmem:[#allocation3] sm:$0xff] %vm28_vm1, %v427_v6  ;;  %v395_v7 = vpack.c.bf16 %v130_v4, %v129_v2  ;;  %375 = vmatprep.mubr.msk.f32.mxu1 %vm25_vm0, %v31_v5  ;;  %v35_v8 = vld [vmem:[%s526_s1] sm:$0xff]  ;;  %v36_v9 = vld [vmem:[%s526_s1 + $0x8] sm:$0xff]  ;;  %v37_v10 = vld [vmem:[%s526_s1 + $0x10] sm:$0xff]  ;;  %364 = vmatprep.mubr.msk.f32.mxu0 %vm25_vm0, %v31_v5 }
   0x4   :  { %392 = vmatprep.subr.bf16.mxu1 %v391_v3  ;;  %v383_v11 = vpack.c.bf16 %v36_v9, %v35_v8  ;;  %v38_v12 = vld [vmem:[%s526_s1 + $0x18] sm:$0xff] }
   0x5   :  { %10 = vsyncpa [#allocation5], 0  ;;  %394 = vmatpush3.bf16.msra.mxu1 %v391_v3  ;;  %v387_v13 = vpack.c.bf16 %v38_v12, %v37_v10  ;;  %v32_v14 = vld [vmem:[%s525_s0 + $0x8] sm:$0xff]  ;;  %v216_v15 = vld [vmem:[%s529_s4] sm:$0xf]  ;;  %vm223_vm2 = vcmask 1043456  }
   0x6   :  { %396 = vmatprep.subr.bf16.mxu1 %v395_v7  ;;  %384 = vmatprep.subr.bf16.mxu0 %v383_v11  ;;  %v340_v31 = vld [vmem:[%s527_s2] ss:$0 sm:$0xff]  ;;  %s428_s4 = smov [#allocation4]  }
   0x7   :  { %386 = vmatpush3.bf16.msra.mxu0 %v383_v11  ;;  %s322_s14 = sshll.u32 %s428_s4, 4  ;;  %s323_s14 = int_to_ptr.vmem [resolvable:$true] %s322_s14 }
   0x8   :  { %388 = vmatprep.subr.bf16.mxu0 %v387_v13  ;;  %v126_v16 = vld [vmem:[#allocation3 + $0x8] sm:$0xff]  ;;  %s403_s15 = scalar_lea.vmem %s323_s14, 256  ;;  %p408_p1 = scmp.lt.s32.totalorder %s323_s14, %s323_s14 }
   0x9   :  { %398 = vmatpush3.bf16.msra.mxu1 %v395_v7  ;;  %v34_v19 = vld [vmem:[#allocation2 + $0x8] sm:$0xff]  ;;  %v33_v22 = vld [vmem:[#allocation2] sm:$0xff]  ;;  %p404_p0 = scmp.ne.s32.totalorder %s323_s14, %s403_s15  ;;  %p409_p2 = scmp.lt.s32.totalorder %s403_s15, %s403_s15 }
   0xa   :  { %v125_v17 = vld [vmem:[#allocation3] sm:$0xff] }
   0xb   :  { %390 = vmatpush3.bf16.msra.mxu0 %v387_v13  ;;  %p410_p3 = por %p409_p2, %p408_p1 }
   0xc   :  { %376 = vmatmul.mubr.msk.f32.vlgmr.msra.gmra.mrb[0].mxu1 %vm25_vm0, %v32_v14  ;;  %378 = vmatprep.subr.msk.mxu0 %vm223_vm2, %v216_v15 }
   0xd   :  { %p411_p4 = pnand %p410_p3, %p404_p0 }
   0xe   :  { %365 = vmatmul.mubr.msk.f32.vlgmr.msra.gmra.mrb[0].mxu0 %vm25_vm0, %v32_v14 }
   0xf   :  { %379 = vmatpush3.msk.msra.mxu0 %vm223_vm2, %v216_v15 }
  0xdf   :  { %v377_v18 = vpop.f32.mrb[0].mxu1 }
  0xe0   :  { %v207_v20 = vadd.f32 %v377_v18, %v126_v16  ;;  %v197_v21 = vpop.f32.mrb[1].mxu1 }
  0xe1   :  { %v206_v23 = vadd.f32 %v197_v21, %v125_v17  ;;  %v366_v24 = vpop.f32.mrb[0].mxu0 }
  0xe2   :  { %210 = vst.msk [vmem:[#allocation3 + $0x8] sm:$0xff] %vm28_vm1, %v207_v20  ;;  %v122_v25 = vadd.f32 %v366_v24, %v34_v19  ;;  %v112_v26 = vpop.f32.mrb[1].mxu0 }
  0xe3   :  { %209 = vst.msk [vmem:[#allocation3] sm:$0xff] %vm28_vm1, %v206_v23  ;;  %v121_v27 = vadd.f32 %v112_v26, %v33_v22 }
  0xe4   :  { %124 = vst.msk [vmem:[#allocation2 + $0x8] sm:$0xff] %vm25_vm0, %v122_v25 }
  0xe5   :  { %123 = vst.msk [vmem:[#allocation2] sm:$0xff] %vm25_vm0, %v121_v27 }
  0xe9   :  { %v215_v29 = vld [vmem:[#allocation3 + $0x8] sm:$0xff] }
  0xea   :  { %v214_v28 = vld [vmem:[#allocation3] sm:$0xff] }
  0xeb   :  { %380 = vmatprep.mubr.msk.f32.mxu0 %vm28_vm1, %v214_v28  ;;  %v303_v30 = vld [vmem:[#allocation2 + $0x8] sm:$0xff] }
  0xec   :  { %381 = vmatmul.mubr.msk.f32.vlgmr.msra.gmra.mrb[2].mxu0 %vm28_vm1, %v215_v29  ;;  %v302_v32 = vld [vmem:[#allocation2] sm:$0xff]  ;;  %v312_v33 = vadd.f32 %v340_v31, %v303_v30 }
  0xed   :  { %v311_v34 = vadd.f32 %v340_v31, %v302_v32 }
 0x1bf   :  { %v382_v35 = vpop.f32.mrb[2].mxu0 }
 0x1c0   :  { %v314_v36 = vadd.f32 %v382_v35, %v312_v33  ;;  %v293_v37 = vpop.f32.mrb[3].mxu0 }
 0x1c1   :  { %v313_v38 = vadd.f32 %v311_v34, %v293_v37 }
 0x1c2   :  { %316 = vst.msk [vmem:[#allocation4 + $0x8] sm:$0xff] %vm25_vm0, %v314_v36 }
 0x1c3   :  { %315 = vst.msk [vmem:[#allocation4] sm:$0xff] %vm25_vm0, %v313_v38 }
 0x1c4   :  { %414 = shalt.err (!%p411_p4)
}
 0x1c5   :  { %s415_s17 = scalar_lea.hbm %s530_s5, 256 }
 0x1c6   :  { %p416_p5 = scmp.ne.s32.totalorder %s530_s5, %s415_s17  ;;  %p419_p6 = scmp.lt.u32.totalorder %s415_s17, %s530_s5 }
 0x1c8   :  { %p421_p7 = pnand %p419_p6, %p416_p5 }
 0x1ca   :  { %424 = shalt.err (!%p421_p7)
}
 0x1cb   :  { %s429_s22 = smov 128   ;;  %s430_s23 = smov 8  }
 0x1cc   :  { %328 = dma.vmem_to_hbm [thread:$0]  %s323_s14, 256, %s530_s5, [#allocation5], %s429_s22, %s429_s22, %s430_s23  }
 0x1cd   :  { %425 = dma.done.wait [#allocation5], 256  }
 0x1ce   :  { %426 = vsyncadd [#allocation5], 4294967040 }
 0x1cf   :  { %332 = vsyncpa [#allocation5], 1 }

</bundles_post_ra>
